<compile_context>
chip_gen: v5e
topology: v5e:2x2
jax: 0.10.0
libtpu: 0.0.40
codegen_flags: <defaults>
</compile_context>

<pallas_src>
import numpy as np
import jax
import jax.numpy as jnp
from jax import lax
from jax.experimental import pallas as pl
from jax.experimental.pallas import tpu as pltpu


def _round_up(n, m):
    return ((n + m - 1) // m) * m


# ---------------------------------------------------------------------------
# Pallas kernel: conv-as-matmul + fc1 + fc2, fused, one batch tile per step.
# ---------------------------------------------------------------------------
def qnet_kernel(x_ref, wc_ref, bc_ref, w1_ref, b1_ref, w2_ref, b2_ref, o_ref):
    # x arrives f32 from HBM; cast to bf16 in-kernel (no separate XLA cast pass).
    x = x_ref[...].astype(jnp.bfloat16)                                # (Bt, 16)
    # ConvBlock (all 4 convs, k=1..4, 'same' padding) + ReLU + Flatten,
    # folded into one matmul.  f32 accumulate, bf16 activation storage.
    h0 = jnp.dot(x, wc_ref[...], preferred_element_type=jnp.float32) + bc_ref[...]
    h0 = jnp.maximum(h0, 0.0).astype(jnp.bfloat16)                     # (Bt, 512)
    # fc1 + ReLU
    h1 = jnp.dot(h0, w1_ref[...], preferred_element_type=jnp.float32) + b1_ref[...]
    h1 = jnp.maximum(h1, 0.0).astype(jnp.bfloat16)                     # (Bt, 128)
    # fc2 -> narrow (Bt, 4) f32 store (16 B/row of output traffic)
    o_ref[...] = jnp.dot(h1, w2_ref[...],
                         preferred_element_type=jnp.float32) + b2_ref[...]


def _choose_tiling(B, b_tile):
    """Pick (tile, B_pad, n_steps) for the 1-D batch grid."""
    B = max(B, 1)
    B8 = _round_up(B, 8)
    # Aim for >= 2 grid steps (shards the 'parallel' axis across both v7x
    # TensorCores) without exceeding b_tile rows per step.
    tile = min(b_tile, max(8, _round_up(-(-B8 // 2), 8)))
    n_steps = -(-B8 // tile)
    if n_steps <= 1:
        # Whole batch fits one step: block == full array dims (always legal),
        # so no jnp.pad HBM pass is needed at all.
        return B, B, 1
    return tile, n_steps * tile, n_steps


def qnetwork_conv_pallas(x, qp, *, b_tile=2048):
    """x: (B, 16) f32.  qp: dict from prepare_qnet_params().  Returns (B, 4) f32."""
    B = x.shape[0]
    tile, B_pad, n_steps = _choose_tiling(B, b_tile)

    if B_pad != B:
        # Zero rows are harmless (row-independent math) and sliced off below.
        x = jnp.pad(x, ((0, B_pad - B), (0, 0)))

    # Weights/biases: full-array blocks, constant index_map -> VMEM-resident
    # across grid steps (only x / out move per step).
    const = lambda shape: pl.BlockSpec(shape, lambda i: (0, 0))

    out = pl.pallas_call(
        qnet_kernel,
        out_shape=jax.ShapeDtypeStruct((B_pad, 4), jnp.float32),
        grid=(n_steps,),
        in_specs=[
            pl.BlockSpec((tile, 16), lambda i: (i, 0)),   # x tile (f32)
            const((16, 512)),                             # Wc (bf16)
            const((1, 512)),                              # bc (f32)
            const((512, 128)),                            # W1 (bf16)
            const((1, 128)),                              # b1 (f32)
            const((128, 4)),                              # W2 (bf16, native width)
            const((1, 4)),                                # b2 (f32)
        ],
        out_specs=pl.BlockSpec((tile, 4), lambda i: (i, 0)),
        compiler_params=pltpu.CompilerParams(
            dimension_semantics=("parallel",),
            vmem_limit_bytes=32 * 1024 * 1024),
    )(x, qp["wc"], qp["bc"], qp["w1"], qp["b1"], qp["w2"], qp["b2"])

    return out if B_pad == B else out[:B]


# ---------------------------------------------------------------------------
# Parameter setup (plain JAX / numpy glue, done once outside the hot path)
# ---------------------------------------------------------------------------
def init_params(key):
    """PyTorch-default-style uniform init for all conv / linear params."""
    ks = list(jax.random.split(key, 12))
    params = {}
    conv_ws, conv_bs = [], []
    d = 32 // 4  # = 8 output channels per conv
    for i, k in enumerate((1, 2, 3, 4)):
        fan_in = 1 * k * k
        bound = 1.0 / np.sqrt(fan_in)
        w = jax.random.uniform(ks[2 * i], (d, 1, k, k), jnp.float32, -bound, bound)
        b = jax.random.uniform(ks[2 * i + 1], (d,), jnp.float32, -bound, bound)
        conv_ws.append(w)
        conv_bs.append(b)
    # fc1: Linear(512 -> 128), fc2: Linear(128 -> 4)  (PyTorch weight is (out, in))
    b1_bound = 1.0 / np.sqrt(512.0)
    fc1_w = jax.random.uniform(ks[8], (128, 512), jnp.float32, -b1_bound, b1_bound)
    fc1_b = jax.random.uniform(ks[9], (128,), jnp.float32, -b1_bound, b1_bound)
    b2_bound = 1.0 / np.sqrt(128.0)
    fc2_w = jax.random.uniform(ks[10], (4, 128), jnp.float32, -b2_bound, b2_bound)
    fc2_b = jax.random.uniform(ks[11], (4,), jnp.float32, -b2_bound, b2_bound)
    params["conv_ws"] = conv_ws
    params["conv_bs"] = conv_bs
    params["fc1_w"], params["fc1_b"] = fc1_w, fc1_b
    params["fc2_w"], params["fc2_b"] = fc2_w, fc2_b
    return params


def conv_block_to_dense(conv_ws, conv_bs):
    """Fold the four 'same'-padded convs (1 input channel, 4x4 spatial) into a
    single dense (16, 512) matrix + (512,) bias, using PyTorch padding='same'
    conventions (left pad = (k-1)//2, right pad = (k-1) - left)."""
    Wc = np.zeros((16, 512), dtype=np.float32)
    bc = np.zeros((512,), dtype=np.float32)
    c_off = 0
    for w, b in zip(conv_ws, conv_bs):
        w = np.asarray(w)
        b = np.asarray(b)
        dch, _, k, _ = w.shape
        p_l = (k - 1) // 2
        for c in range(dch):
            cc = c_off + c
            for h in range(4):
                for wp in range(4):
                    oi = cc * 16 + h * 4 + wp
                    bc[oi] = b[c]
                    for kh in range(k):
                        for kw in range(k):
                            ih = h + kh - p_l
                            iw = wp + kw - p_l
                            if 0 <= ih < 4 and 0 <= iw < 4:
                                Wc[ih * 4 + iw, oi] += w[c, 0, kh, kw]
        c_off += dch
    return jnp.asarray(Wc), jnp.asarray(bc)


def prepare_qnet_params(params):
    """One-time prep: fold convs, transpose FC weights, cast matmul operands to
    bf16, reshape biases to (1, N) f32 rows.  Done outside the per-call path."""
    Wc, bc = conv_block_to_dense(params["conv_ws"], params["conv_bs"])
    return {
        "wc": Wc.astype(jnp.bfloat16),                        # (16, 512)
        "bc": bc[None, :].astype(jnp.float32),                # (1, 512)
        "w1": params["fc1_w"].T.astype(jnp.bfloat16),         # (512, 128)
        "b1": params["fc1_b"][None, :].astype(jnp.float32),   # (1, 128)
        "w2": params["fc2_w"].T.astype(jnp.bfloat16),         # (128, 4)
        "b2": params["fc2_b"][None, :].astype(jnp.float32),   # (1, 4)
    }


# ---------------------------------------------------------------------------
# Pure-JAX reference (mirrors the PyTorch forward exactly, f32 everywhere)
# ---------------------------------------------------------------------------
def reference_forward(x, params):
    B = x.shape[0]
    img = x.reshape(B, 1, 4, 4)
    outs = []
    for w, b in zip(params["conv_ws"], params["conv_bs"]):
        k = w.shape[-1]
        p_l = (k - 1) // 2
        p_r = (k - 1) - p_l
        y = lax.conv_general_dilated(
            img, w, window_strides=(1, 1),
            padding=[(p_l, p_r), (p_l, p_r)],
            dimension_numbers=("NCHW", "OIHW", "NCHW"))
        y = y + b[None, :, None, None]
        outs.append(jnp.maximum(y, 0.0))
    h = jnp.concatenate(outs, axis=1).reshape(B, -1)          # nn.Flatten (NCHW order)
    h = jnp.maximum(h @ params["fc1_w"].T + params["fc1_b"], 0.0)
    return h @ params["fc2_w"].T + params["fc2_b"]


if __name__ == "__main__":
    key = jax.random.PRNGKey(0)
    k_x, k_p = jax.random.split(key)

    # Input: batch of 2 flattened 4x4 single-channel boards, shape (2, 16)
    x = jax.random.normal(k_x, (2, 16), dtype=jnp.float32)

    params = init_params(k_p)
    qp = prepare_qnet_params(params)

    out = qnetwork_conv_pallas(x, qp)
    out = jax.block_until_ready(out)

    ref = jax.block_until_ready(reference_forward(x, params))
    # bf16 matmul operands / bf16 intermediate activations with f32 accumulation
    # -> loosened tolerance (note: downstream argmax ties may flip at this precision).
    np.testing.assert_allclose(np.asarray(out), np.asarray(ref), rtol=2e-2, atol=2e-2)

    print("KERNEL_OK")
</pallas_src>

<mosaic_0001>
module attributes {stable_mosaic.version = 11 : i64} {
  func.func @qnet_kernel(%arg0: i32, %arg1: memref<2x16xf32, #tpu.memory_space<vmem>>, %arg2: memref<16x512xbf16, #tpu.memory_space<vmem>>, %arg3: memref<1x512xf32, #tpu.memory_space<vmem>>, %arg4: memref<512x128xbf16, #tpu.memory_space<vmem>>, %arg5: memref<1x128xf32, #tpu.memory_space<vmem>>, %arg6: memref<128x4xbf16, #tpu.memory_space<vmem>>, %arg7: memref<1x4xf32, #tpu.memory_space<vmem>>, %arg8: memref<2x4xf32, #tpu.memory_space<vmem>>) attributes {dimension_semantics = [#tpu.dimension_semantics<parallel>], iteration_bounds = array<i64: 1>, scalar_prefetch = 0 : i64, scratch_operands = 0 : i64, tpu.core_type = #tpu.core_type<tc>, window_params = [{transform_indices = @transform_0, window_bounds = array<i64: 2, 16>}, {pipeline_mode = #tpu.pipeline_mode<synchronous>, transform_indices = @transform_1, window_bounds = array<i64: 16, 512>}, {pipeline_mode = #tpu.pipeline_mode<synchronous>, transform_indices = @transform_2, window_bounds = array<i64: 1, 512>}, {pipeline_mode = #tpu.pipeline_mode<synchronous>, transform_indices = @transform_3, window_bounds = array<i64: 512, 128>}, {pipeline_mode = #tpu.pipeline_mode<synchronous>, transform_indices = @transform_4, window_bounds = array<i64: 1, 128>}, {pipeline_mode = #tpu.pipeline_mode<synchronous>, transform_indices = @transform_5, window_bounds = array<i64: 128, 4>}, {pipeline_mode = #tpu.pipeline_mode<synchronous>, transform_indices = @transform_6, window_bounds = array<i64: 1, 4>}, {transform_indices = @transform_7, window_bounds = array<i64: 2, 4>}]} {
    %c0 = arith.constant 0 : index
    %c0_0 = arith.constant 0 : index
    %0 = vector.load %arg1[%c0, %c0_0] : memref<2x16xf32, #tpu.memory_space<vmem>>, vector<2x16xf32>
    %1 = arith.truncf %0 : vector<2x16xf32> to vector<2x16xbf16>
    %c0_1 = arith.constant 0 : index
    %c0_2 = arith.constant 0 : index
    %2 = vector.load %arg2[%c0_1, %c0_2] : memref<16x512xbf16, #tpu.memory_space<vmem>>, vector<16x512xbf16>
    %cst = arith.constant dense<0.000000e+00> : vector<2x512xf32>
    %3 = tpu.matmul %1, %2, %cst {dimension_numbers = #tpu.dot_dimension_numbers<[1], [0], [0], [1], [0, 0, 1, 1], [], []>} : vector<2x16xbf16>, vector<16x512xbf16>, vector<2x512xf32> -> vector<2x512xf32>
    %c0_3 = arith.constant 0 : index
    %c0_4 = arith.constant 0 : index
    %4 = vector.load %arg3[%c0_3, %c0_4] : memref<1x512xf32, #tpu.memory_space<vmem>>, vector<1x512xf32>
    %5 = vector.broadcast %4 : vector<1x512xf32> to vector<2x512xf32>
    %6 = arith.addf %3, %5 : vector<2x512xf32>
    %cst_5 = arith.constant 0.000000e+00 : f32
    %7 = vector.broadcast %cst_5 : f32 to vector<2x512xf32>
    %8 = arith.maximumf %6, %7 : vector<2x512xf32>
    %9 = arith.truncf %8 : vector<2x512xf32> to vector<2x512xbf16>
    %c0_6 = arith.constant 0 : index
    %c0_7 = arith.constant 0 : index
    %10 = vector.load %arg4[%c0_6, %c0_7] : memref<512x128xbf16, #tpu.memory_space<vmem>>, vector<512x128xbf16>
    %cst_8 = arith.constant dense<0.000000e+00> : vector<2x128xf32>
    %11 = tpu.matmul %9, %10, %cst_8 {dimension_numbers = #tpu.dot_dimension_numbers<[1], [0], [0], [1], [0, 0, 1, 1], [], []>} : vector<2x512xbf16>, vector<512x128xbf16>, vector<2x128xf32> -> vector<2x128xf32>
    %c0_9 = arith.constant 0 : index
    %c0_10 = arith.constant 0 : index
    %12 = vector.load %arg5[%c0_9, %c0_10] : memref<1x128xf32, #tpu.memory_space<vmem>>, vector<1x128xf32>
    %13 = vector.broadcast %12 : vector<1x128xf32> to vector<2x128xf32>
    %14 = arith.addf %11, %13 : vector<2x128xf32>
    %cst_11 = arith.constant 0.000000e+00 : f32
    %15 = vector.broadcast %cst_11 : f32 to vector<2x128xf32>
    %16 = arith.maximumf %14, %15 : vector<2x128xf32>
    %17 = arith.truncf %16 : vector<2x128xf32> to vector<2x128xbf16>
    %c0_12 = arith.constant 0 : index
    %c0_13 = arith.constant 0 : index
    %18 = vector.load %arg6[%c0_12, %c0_13] : memref<128x4xbf16, #tpu.memory_space<vmem>>, vector<128x4xbf16>
    %cst_14 = arith.constant dense<0.000000e+00> : vector<2x4xf32>
    %19 = tpu.matmul %17, %18, %cst_14 {dimension_numbers = #tpu.dot_dimension_numbers<[1], [0], [0], [1], [0, 0, 1, 1], [], []>} : vector<2x128xbf16>, vector<128x4xbf16>, vector<2x4xf32> -> vector<2x4xf32>
    %c0_15 = arith.constant 0 : index
    %c0_16 = arith.constant 0 : index
    %20 = vector.load %arg7[%c0_15, %c0_16] : memref<1x4xf32, #tpu.memory_space<vmem>>, vector<1x4xf32>
    %21 = vector.broadcast %20 : vector<1x4xf32> to vector<2x4xf32>
    %22 = arith.addf %19, %21 : vector<2x4xf32>
    %c0_17 = arith.constant 0 : index
    %c0_18 = arith.constant 0 : index
    %23 = vector.load %arg8[%c0_17, %c0_18] : memref<2x4xf32, #tpu.memory_space<vmem>>, vector<2x4xf32>
    tpu.vector_store %arg8[%c0_17, %c0_18], %22 {strides = array<i32>} : memref<2x4xf32, #tpu.memory_space<vmem>>, vector<2x4xf32>,
    return
  }
  func.func @transform_0(%arg0: i32) -> (i32, i32) {
    %c0_i32 = arith.constant 0 : i32
    %c0_i32_0 = arith.constant 0 : i32
    return %arg0, %c0_i32 : i32, i32
  }
  func.func @transform_1(%arg0: i32) -> (i32, i32) {
    %c0_i32 = arith.constant 0 : i32
    %c0_i32_0 = arith.constant 0 : i32
    %c0_i32_1 = arith.constant 0 : i32
    return %c0_i32, %c0_i32_0 : i32, i32
  }
  func.func @transform_2(%arg0: i32) -> (i32, i32) {
    %c0_i32 = arith.constant 0 : i32
    %c0_i32_0 = arith.constant 0 : i32
    %c0_i32_1 = arith.constant 0 : i32
    return %c0_i32, %c0_i32_0 : i32, i32
  }
  func.func @transform_3(%arg0: i32) -> (i32, i32) {
    %c0_i32 = arith.constant 0 : i32
    %c0_i32_0 = arith.constant 0 : i32
    %c0_i32_1 = arith.constant 0 : i32
    return %c0_i32, %c0_i32_0 : i32, i32
  }
  func.func @transform_4(%arg0: i32) -> (i32, i32) {
    %c0_i32 = arith.constant 0 : i32
    %c0_i32_0 = arith.constant 0 : i32
    %c0_i32_1 = arith.constant 0 : i32
    return %c0_i32, %c0_i32_0 : i32, i32
  }
  func.func @transform_5(%arg0: i32) -> (i32, i32) {
    %c0_i32 = arith.constant 0 : i32
    %c0_i32_0 = arith.constant 0 : i32
    %c0_i32_1 = arith.constant 0 : i32
    return %c0_i32, %c0_i32_0 : i32, i32
  }
  func.func @transform_6(%arg0: i32) -> (i32, i32) {
    %c0_i32 = arith.constant 0 : i32
    %c0_i32_0 = arith.constant 0 : i32
    %c0_i32_1 = arith.constant 0 : i32
    return %c0_i32, %c0_i32_0 : i32, i32
  }
  func.func @transform_7(%arg0: i32) -> (i32, i32) {
    %c0_i32 = arith.constant 0 : i32
    %c0_i32_0 = arith.constant 0 : i32
    return %arg0, %c0_i32 : i32, i32
  }
}

</mosaic_0001>

<bundles_post_ra>
// kernel: tpu_custom_call.1
= control target key start
LH: loop header
LB: loop body
LE: loop exit
PB: predicated region body
PF: predicated region fallthrough
CT: control target
= control target key end

     0   :  { %12 = vsyncpa [#allocation3], 0  ;;  %s954_s0 = inlined_call_operand.vmem [shape: f32[2,16], index: 0, kind: input, shape index: {}]   ;;  %s955_s1 = inlined_call_operand.vmem [shape: bf16[16,512], index: 1, kind: input, shape index: {}]   ;;  %s956_s2 = inlined_call_operand.vmem [shape: f32[1,512], index: 2, kind: input, shape index: {}]   ;;  %s957_s3 = inlined_call_operand.hbm [shape: bf16[512,128], index: 3, kind: input, shape index: {}]   ;;  %s958_s4 = inlined_call_operand.vmem [shape: f32[1,128], index: 4, kind: input, shape index: {}]   ;;  %s959_s5 = inlined_call_operand.vmem [shape: bf16[128,4], index: 5, kind: input, shape index: {}]   ;;  %s960_s6 = inlined_call_operand.vmem [shape: f32[1,4], index: 6, kind: input, shape index: {}]   ;;  %s961_s7 = inlined_call_operand.hbm [shape: f32[2,4], index: 7, kind: output, shape index: {}]  }
   0x1   :  { %13 = vsyncpa [#allocation4], 0  ;;  %s24_s26 = sshll.u32 %s957_s3, 4  ;;  %s840_s27 = smov [#allocation2]   ;;  %s25_s26 = int_to_ptr.hbm [resolvable:$true] %s24_s26 }
   0x2   :  { %s26_s28 = sshll.u32 %s840_s27, 4  ;;  %s841_s29 = smov 64   ;;  %s27_s28 = int_to_ptr.vmem [resolvable:$true] %s26_s28 }
   0x3   :  { %s842_s30 = smov 4  }
   0x4   :  { %32 = dma.hbm_to_vmem [thread:$0]  %s25_s26, 4096, %s27_s28, [#allocation3], %s841_s29, %s841_s29, %s842_s30  }
   0x5   :  { %836 = dma.done.wait [#allocation3], 4096  }
   0x6   :  { %837 = vsyncadd [#allocation3], 4294963200  ;;  %v560_v0 = vld [vmem:[%s955_s1] sm:$0xf]  ;;  %v740_v1 = vld [vmem:[%s955_s1 + $0xc] sm:$0xf0] }
   0x7   :  { %v568_v2 = vld [vmem:[%s955_s1 + $0x8] sm:$0xf]  ;;  %v561_v3 = vor.u32 %v740_v1, %v560_v0  ;;  %v741_v4 = vld [vmem:[%s955_s1 + $0x14] sm:$0xf0]  ;;  %v739_v5 = vld [vmem:[%s955_s1 + $0xc] sm:$0xf] }
   0x8   :  { %v570_v6 = vld [vmem:[%s955_s1 + $0x18] sm:$0xf0]  ;;  %v569_v7 = vor.u32 %v741_v4, %v568_v2  ;;  %v44_v9 = vld [vmem:[%s954_s0] sm:$0x3]  ;;  %v738_v10 = vld [vmem:[%s955_s1 + $0x4] sm:$0xf] }
   0x9   :  { %v573_v8 = vor.u32 %v739_v5, %v570_v6  ;;  %v562_v11 = vld [vmem:[%s955_s1 + $0x10] sm:$0xf0]  ;;  %91 = vmatpush.bf16.msra.mxu1 %v561_v3  ;;  %v45_v12 = vpack.c.bf16 %v44_v9, %v44_v9  ;;  %vm80_vm0 = vcmask 130048   ;;  %v749_v14 = vld [vmem:[#allocation2 + $0x38] sm:$0xff]  ;;  %v747_v22 = vld [vmem:[#allocation2 + $0x28] sm:$0xff]  ;;  %s843_s19 = smov [#allocation5]  }
   0xa   :  { %v565_v13 = vor.u32 %v738_v10, %v562_v11  ;;  %v765_v15 = vld [vmem:[#allocation2 + $0xb8] sm:$0xff]  ;;  %117 = vmatpush.bf16.msra.mxu2 %v569_v7  ;;  %404 = vmatpush.bf16.msra.mxu0 %v749_v14  ;;  %v748_v17 = vld [vmem:[#allocation2 + $0x30] sm:$0xff]  ;;  %v763_v23 = vld [vmem:[#allocation2 + $0xa8] sm:$0xff]  ;;  %s546_s20 = sshll.u32 %s843_s19, 4  ;;  %s548_s22 = sshll.u32 %s961_s7, 4  ;;  %vm539_vm1 = vcmask 25600   ;;  %s547_s20 = int_to_ptr.vmem [resolvable:$true] %s546_s20  ;;  %s549_s22 = int_to_ptr.hbm [resolvable:$true] %s548_s22 }
   0xb   :  { %130 = vmatpush.bf16.msra.mxu3 %v573_v8  ;;  %v773_v16 = vld [vmem:[#allocation2 + $0xf8] sm:$0xff]  ;;  %v764_v18 = vld [vmem:[#allocation2 + $0xb0] sm:$0xff]  ;;  %v771_v24 = vld [vmem:[#allocation2 + $0xe8] sm:$0xff] }
   0xc   :  { %574 = vmatmul.msk.bf16.vlgmr.msra.gmra.mxu1 %vm80_vm0, %v45_v12  ;;  %v757_v19 = vld [vmem:[#allocation2 + $0x78] sm:$0xff]  ;;  %v772_v20 = vld [vmem:[#allocation2 + $0xf0] sm:$0xff]  ;;  %v746_v25 = vld [vmem:[#allocation2 + $0x20] sm:$0xff] }
   0xd   :  { %104 = vmatpush.bf16.msrb.mxu1 %v565_v13  ;;  %576 = vmatmul.msk.bf16.vlgmr.msra.gmra.mxu2 %vm80_vm0, %v45_v12  ;;  %v756_v21 = vld [vmem:[#allocation2 + $0x70] sm:$0xff]  ;;  %v762_v26 = vld [vmem:[#allocation2 + $0xa0] sm:$0xff]  ;;  %v745_v28 = vld [vmem:[#allocation2 + $0x18] sm:$0xff] }
   0xe   :  { %430 = vmatpush.bf16.msrb.mxu2 %v765_v15  ;;  %577 = vmatmul.msk.bf16.vlgmr.msra.gmra.mxu3 %vm80_vm0, %v45_v12  ;;  %v770_v27 = vld [vmem:[#allocation2 + $0xe0] sm:$0xff]  ;;  %v761_v29 = vld [vmem:[#allocation2 + $0x98] sm:$0xff]  ;;  %v744_v31 = vld [vmem:[#allocation2 + $0x10] sm:$0xff] }
   0xf   :  { %443 = vmatpush.bf16.msrb.mxu3 %v773_v16  ;;  %405 = vmatpush.bf16.msra.mxu0 %v748_v17  ;;  %v769_v30 = vld [vmem:[#allocation2 + $0xd8] sm:$0xff]  ;;  %v743_v32 = vld [vmem:[#allocation2 + $0x8] sm:$0xff]  ;;  %v760_v34 = vld [vmem:[#allocation2 + $0x90] sm:$0xff] }
  0x10   :  { %v755_v33 = vld [vmem:[#allocation2 + $0x68] sm:$0xff]  ;;  %v768_v35 = vld [vmem:[#allocation2 + $0xd0] sm:$0xff]  ;;  %v742_v36 = vld [vmem:[#allocation2] sm:$0xff] }
  0x11   :  { %417 = vmatpush.bf16.msra.mxu1 %v757_v19  ;;  %v754_v37 = vld [vmem:[#allocation2 + $0x60] sm:$0xff]  ;;  %v759_v38 = vld [vmem:[#allocation2 + $0x88] sm:$0xff]  ;;  %v753_v40 = vld [vmem:[#allocation2 + $0x58] sm:$0xff] }
  0x12   :  { %431 = vmatpush.bf16.msrb.mxu2 %v764_v18  ;;  %v767_v39 = vld [vmem:[#allocation2 + $0xc8] sm:$0xff]  ;;  %v758_v41 = vld [vmem:[#allocation2 + $0x80] sm:$0xff]  ;;  %v752_v43 = vld [vmem:[#allocation2 + $0x50] sm:$0xff] }
  0x13   :  { %444 = vmatpush.bf16.msrb.mxu3 %v772_v20  ;;  %406 = vmatpush.bf16.msra.mxu0 %v747_v22  ;;  %v766_v42 = vld [vmem:[#allocation2 + $0xc0] sm:$0xff]  ;;  %v751_v44 = vld [vmem:[#allocation2 + $0x48] sm:$0xff]  ;;  %v781_v46 = vld [vmem:[%s959_s5 + $0x38] sm:$0xff] }
  0x14   :  { %v750_v45 = vld [vmem:[#allocation2 + $0x40] sm:$0xff]  ;;  %v780_v8 = vld [vmem:[%s959_s5 + $0x30] sm:$0xff]  ;;  %v779_v9 = vld [vmem:[%s959_s5 + $0x28] sm:$0xff] }
  0x15   :  { %418 = vmatpush.bf16.msra.mxu1 %v756_v21  ;;  %v50_v47 = vld [vmem:[%s956_s2] sm:$0xf]  ;;  %v777_v11 = vld [vmem:[%s959_s5 + $0x18] sm:$0xff]  ;;  %v775_v13 = vld [vmem:[%s959_s5 + $0x8] sm:$0xff] }
  0x16   :  { %432 = vmatpush.bf16.msrb.mxu2 %v763_v23  ;;  %v52_v48 = vperm.slane %v50_v47, 0  ;;  %v54_v52 = vperm.slane %v50_v47, 2  ;;  %v55_v53 = vperm.slane %v50_v47, 3  ;;  %v53_v0 = vperm.slane %v50_v47, 1  ;;  %v778_v10 = vld [vmem:[%s959_s5 + $0x20] sm:$0xff] }
  0x17   :  { %445 = vmatpush.bf16.msrb.mxu3 %v771_v24  ;;  %407 = vmatpush.bf16.msra.mxu0 %v746_v25  ;;  %v774_v14 = vld [vmem:[%s959_s5] sm:$0xff] }
  0x18   :  { %v786_v17 = vld [vmem:[%s958_s4] ss:$0 sm:$0xff] }
  0x19   :  { %419 = vmatpush.bf16.msra.mxu1 %v755_v33 }
  0x1a   :  { %433 = vmatpush.bf16.msrb.mxu2 %v762_v26 }
  0x1b   :  { %446 = vmatpush.bf16.msrb.mxu3 %v770_v27  ;;  %408 = vmatpush.bf16.msra.mxu0 %v745_v28 }
  0x1c   :  { %575 = vmatmul.msk.bf16.vlgmr.msrb.gmra.mxu1 %vm80_vm0, %v45_v12  ;;  %v776_v12 = vld [vmem:[%s959_s5 + $0x10] sm:$0xff] }
  0x1d   :  { %420 = vmatpush.bf16.msra.mxu1 %v754_v37 }
  0x1e   :  { %434 = vmatpush.bf16.msrb.mxu2 %v761_v29 }
  0x1f   :  { %447 = vmatpush.bf16.msrb.mxu3 %v769_v30  ;;  %409 = vmatpush.bf16.msra.mxu0 %v744_v31  ;;  %v787_v30 = vld [vmem:[%s960_s6] ss:$0 sm:$0xff] }
  0x21   :  { %421 = vmatpush.bf16.msra.mxu1 %v753_v40 }
  0x22   :  { %435 = vmatpush.bf16.msrb.mxu2 %v760_v34 }
  0x23   :  { %410 = vmatpush.bf16.msra.mxu0 %v743_v32  ;;  %448 = vmatpush.bf16.msrb.mxu3 %v768_v35 }
  0x25   :  { %422 = vmatpush.bf16.msra.mxu1 %v752_v43 }
  0x26   :  { %436 = vmatpush.bf16.msrb.mxu2 %v759_v38 }
  0x27   :  { %411 = vmatpush.bf16.msra.mxu0 %v742_v36  ;;  %449 = vmatpush.bf16.msrb.mxu3 %v767_v39 }
  0x29   :  { %423 = vmatpush.bf16.msra.mxu1 %v751_v44 }
  0x2a   :  { %437 = vmatpush.bf16.msrb.mxu2 %v758_v41 }
  0x2b   :  { %450 = vmatpush.bf16.msrb.mxu3 %v766_v42  ;;  %526 = vmatpush.bf16.msrb.mxu0 %v781_v46 }
  0x2d   :  { %424 = vmatpush.bf16.msra.mxu1 %v750_v45 }
  0x2f   :  { %527 = vmatpush.bf16.msrb.mxu0 %v780_v8 }
  0x33   :  { %528 = vmatpush.bf16.msrb.mxu0 %v779_v9 }
  0x37   :  { %529 = vmatpush.bf16.msrb.mxu0 %v778_v10 }
  0x3b   :  { %530 = vmatpush.bf16.msrb.mxu0 %v777_v11 }
  0x3f   :  { %531 = vmatpush.bf16.msrb.mxu0 %v776_v12 }
  0x43   :  { %532 = vmatpush.bf16.msrb.mxu0 %v775_v13 }
  0x47   :  { %533 = vmatpush.bf16.msrb.mxu0 %v774_v14 }
  0x89   :  { %v93_v49 = vpop.f32.mrf.mxu1 }
  0x8a   :  { %v94_v50 = vadd.f32 %v93_v49, %v52_v48 }
  0x8c   :  { %v136_v51 = vmax.f32 %v94_v50, 0.0 }
  0x8e   :  { %v140_v54 = vpack.c.bf16 %v136_v51, %v136_v51 }
  0x90   :  { %v119_v55 = vpop.f32.mrf.mxu2  ;;  %412 = vmatmul.bf16.vlgmr.msra.gmra.mxu0 %v140_v54 }
  0x91   :  { %v132_v56 = vpop.f32.mrf.mxu3  ;;  %v120_v57 = vadd.f32 %v119_v55, %v54_v52  ;;  %v95_v59 = vpop.f32.mrf.mxu1 }
  0x92   :  { %v133_v58 = vadd.f32 %v132_v56, %v55_v53 }
  0x93   :  { %v138_v60 = vmax.f32 %v120_v57, 0.0 }
  0x94   :  { %v139_v61 = vmax.f32 %v133_v58, 0.0 }
  0x95   :  { %v142_v62 = vpack.c.bf16 %v138_v60, %v138_v60 }
  0x96   :  { %v143_v63 = vpack.c.bf16 %v139_v61, %v139_v61 }
  0x97   :  { %438 = vmatmul.bf16.vlgmr.msrb.gmra.mxu2 %v142_v62 }
  0x98   :  { %451 = vmatmul.bf16.vlgmr.msrb.gmra.mxu3 %v143_v63  ;;  %v121_v1 = vpop.f32.mrf.mxu2 }
  0x99   :  { %v134_v2 = vpop.f32.mrf.mxu3  ;;  %v106_v3 = vpop.f32.mrf.mxu1 }
  0x9a   :  { %v107_v4 = vadd.f32 %v106_v3, %v53_v0 }
  0x9c   :  { %v137_v5 = vmax.f32 %v107_v4, 0.0 }
  0x9e   :  { %v141_v6 = vpack.c.bf16 %v137_v5, %v137_v5 }
  0xa0   :  { %425 = vmatmul.bf16.vlgmr.msra.gmra.mxu1 %v141_v6 }
  0xa1   :  { %v108_v7 = vpop.f32.mrf.mxu1 }
 0x10d   :  { %v413_v15 = vpop.f32.mrf.mxu0 }
 0x10e   :  { %v414_v20 = vadd.f32 %v786_v17, %v413_v15 }
 0x115   :  { %v415_v16 = vpop.f32.mrf.mxu0 }
 0x11a   :  { %v439_v18 = vpop.f32.mrf.mxu2 }
 0x11b   :  { %v452_v19 = vpop.f32.mrf.mxu3 }
 0x11d   :  { %v426_v21 = vpop.f32.mrf.mxu1 }
 0x11e   :  { %v427_v22 = vadd.f32 %v426_v21, %v414_v20 }
 0x120   :  { %v440_v23 = vadd.f32 %v439_v18, %v427_v22 }
 0x122   :  { %v453_v24 = vadd.f32 %v452_v19, %v440_v23  ;;  %v441_v25 = vpop.f32.mrf.mxu2 }
 0x123   :  { %v454_v26 = vpop.f32.mrf.mxu3 }
 0x124   :  { %v456_v27 = vmax.f32 %v453_v24, 0.0 }
 0x125   :  { %v428_v28 = vpop.f32.mrf.mxu1 }
 0x126   :  { %v457_v29 = vpack.c.bf16 %v456_v27, %v456_v27 }
 0x128   :  { %534 = vmatmul.bf16.vlgmr.msrb.gmra.mxu0 %v457_v29 }
 0x1a5   :  { %v535_v31 = vpop.f32.mrf.mxu0 }
 0x1a6   :  { %v536_v32 = vadd.f32 %v787_v30, %v535_v31 }
 0x1a8   :  { %540 = vst.msk [vmem:[#allocation5] sm:$0x3] %vm539_vm1, %v536_v32 }
 0x1a9   :  { %551 = dma.vmem_to_hbm [thread:$0]  %s547_s20, 32, %s549_s22, [#allocation4]  }
 0x1ad   :  { %v537_v33 = vpop.f32.mrf.mxu0 }
 0x1ae   :  { %838 = dma.done.wait [#allocation4], 32  }
 0x1af   :  { %839 = vsyncadd [#allocation4], 4294967264 }
 0x1b0   :  { %556 = vsyncpa [#allocation3], 1 }
 0x1b1   :  { %557 = vsyncpa [#allocation4], 1 }

</bundles_post_ra>
